<compile_context>
chip_gen: v7x
topology: tpu7x:2x2x1
jax: 0.10.0
libtpu: 0.0.40
codegen_flags: <defaults>
</compile_context>

<pallas_src>
import jax
import jax.numpy as jnp
from jax.experimental import pallas as pl
from jax.experimental.pallas import tpu as pltpu


def _rnn_kernel(x_ref, h0_ref, c0_ref, gpack_ref, lpack_ref,
                out_ref, hT_ref, cT_ref):
    T, in_sz = x_ref.shape
    H = h0_ref.shape[1]
    K = in_sz + H

    # Packed, pre-transposed parameters (loaded once; static sublane slices).
    w_gates = gpack_ref[0:K, :]          # (K, 4H)  == [W_ih^T ; W_hh^T]
    b_gates = gpack_ref[K:K + 1, :]      # (1, 4H)  == b_ih + b_hh

    h = h0_ref[...]                      # (1, H)  carried in vregs
    c = c0_ref[...]                      # (1, H)  carried in vregs

    # T is a trace-time constant (== 1 for this module); fully unrolled.
    for t in range(T):
        xh = jnp.concatenate([x_ref[t:t + 1, :], h], axis=1)            # (1, K)
        gates = (jnp.dot(xh, w_gates, preferred_element_type=jnp.float32)
                 + b_gates)                                             # (1, 4H)
        sig = jax.nn.sigmoid(gates)      # one full-vreg EUP pass
        tnh = jnp.tanh(gates)            # one full-vreg EUP pass
        i_g = sig[:, 0:H]
        f_g = sig[:, H:2 * H]
        g_g = tnh[:, 2 * H:3 * H]
        o_g = sig[:, 3 * H:4 * H]
        c = f_g * c + i_g * g_g
        h = o_g * jnp.tanh(c)

    hT_ref[...] = h
    cT_ref[...] = c

    # Output Linear: (1, H) @ (H, out) + b   (== self.lin(output.view(1, -1)))
    w_lin = lpack_ref[0:H, :]            # (H, out)
    b_lin = lpack_ref[H:H + 1, :]        # (1, out)
    out_ref[...] = jnp.dot(h, w_lin, preferred_element_type=jnp.float32) + b_lin


def rnn_forward(x, hidden, params):
    """x: (T, input_size) f32; hidden: (h0, c0) each (1, 1, H).

    Returns (logits (1, output_size), (hT, cT) each (1, 1, H))."""
    T, input_size = x.shape
    assert T == 1, "PyTorch forward's output.view(1, -1) requires seq_len == 1"
    h0, c0 = hidden
    H = h0.shape[-1]
    w_ih, w_hh, b_ih, b_hh, w_lin, b_lin = params
    out_size = w_lin.shape[0]

    # One-time host-side packing: pre-transpose, fuse gate matmuls, append bias row.
    gpack = jnp.concatenate(
        [w_ih.T, w_hh.T, (b_ih + b_hh).reshape(1, 4 * H)], axis=0)   # (in+H+1, 4H)
    lpack = jnp.concatenate(
        [w_lin.T, b_lin.reshape(1, out_size)], axis=0)               # (H+1, out)

    vmem = pl.BlockSpec(memory_space=pltpu.MemorySpace.VMEM)

    out, hT, cT = pl.pallas_call(
        _rnn_kernel,
        out_shape=(
            jax.ShapeDtypeStruct((1, out_size), jnp.float32),
            jax.ShapeDtypeStruct((1, H), jnp.float32),
            jax.ShapeDtypeStruct((1, H), jnp.float32),
        ),
        in_specs=[vmem] * 5,
        out_specs=(vmem, vmem, vmem),
        # h0 -> hT and c0 -> cT share buffers (cheap state threading in a decode loop).
        input_output_aliases={1: 1, 2: 2},
    )(x, h0.reshape(1, H), c0.reshape(1, H), gpack, lpack)

    return out, (hT.reshape(1, 1, H), cT.reshape(1, 1, H))


def init_params(key, input_size, hidden_size, output_size):
    ks = jax.random.split(key, 6)
    k_lstm = 1.0 / jnp.sqrt(hidden_size)
    w_ih = jax.random.uniform(ks[0], (4 * hidden_size, input_size),
                              jnp.float32, -k_lstm, k_lstm)
    w_hh = jax.random.uniform(ks[1], (4 * hidden_size, hidden_size),
                              jnp.float32, -k_lstm, k_lstm)
    b_ih = jax.random.uniform(ks[2], (4 * hidden_size,),
                              jnp.float32, -k_lstm, k_lstm)
    b_hh = jax.random.uniform(ks[3], (4 * hidden_size,),
                              jnp.float32, -k_lstm, k_lstm)
    k_lin = 1.0 / jnp.sqrt(hidden_size)
    w_lin = jax.random.uniform(ks[4], (output_size, hidden_size),
                               jnp.float32, -k_lin, k_lin)
    b_lin = jax.random.uniform(ks[5], (output_size,),
                               jnp.float32, -k_lin, k_lin)
    return w_ih, w_hh, b_ih, b_hh, w_lin, b_lin


def _reference(x, hidden, params):
    """Pure-JAX reference of the PyTorch forward (for verification)."""
    h, c = (hidden[0].reshape(1, -1), hidden[1].reshape(1, -1))
    w_ih, w_hh, b_ih, b_hh, w_lin, b_lin = params
    H = h.shape[-1]
    for t in range(x.shape[0]):
        g = x[t:t + 1] @ w_ih.T + h @ w_hh.T + b_ih + b_hh
        i = jax.nn.sigmoid(g[:, 0:H])
        f = jax.nn.sigmoid(g[:, H:2 * H])
        gg = jnp.tanh(g[:, 2 * H:3 * H])
        o = jax.nn.sigmoid(g[:, 3 * H:4 * H])
        c = f * c + i * gg
        h = o * jnp.tanh(c)
    out = h @ w_lin.T + b_lin
    return out, (h.reshape(1, 1, H), c.reshape(1, 1, H))


if __name__ == "__main__":
    input_size, hidden_size, output_size = 32, 32, 32
    seq_len = 1  # forced by the PyTorch forward (output.view(1, -1) -> Linear)

    key = jax.random.PRNGKey(0)
    k_x, k_p = jax.random.split(key)
    params = init_params(k_p, input_size, hidden_size, output_size)

    x = jax.random.normal(k_x, (seq_len, input_size), jnp.float32)
    hidden = (jnp.zeros((1, 1, hidden_size), jnp.float32),
              jnp.zeros((1, 1, hidden_size), jnp.float32))

    # Pure-JAX reference (computed first; kernel inputs x / hidden are never donated,
    # only the reshaped/packed temporaries are aliased into the outputs).
    ref_out, (ref_h, ref_c) = _reference(x, hidden, params)

    out, (hT, cT) = rnn_forward(x, hidden, params)
    jax.block_until_ready((out, hT, cT))

    assert out.shape == (1, output_size)
    assert hT.shape == (1, 1, hidden_size) and cT.shape == (1, 1, hidden_size)
    assert jnp.allclose(out, ref_out, atol=1e-4)
    assert jnp.allclose(hT, ref_h, atol=1e-4)
    assert jnp.allclose(cT, ref_c, atol=1e-4)

    print("KERNEL_OK")
</pallas_src>

<mosaic_0001>
module attributes {stable_mosaic.version = 11 : i64} {
  func.func @_rnn_kernel(%arg0: memref<1x32xf32, #tpu.memory_space<vmem>>, %arg1: memref<1x32xf32, #tpu.memory_space<vmem>>, %arg2: memref<1x32xf32, #tpu.memory_space<vmem>>, %arg3: memref<65x128xf32, #tpu.memory_space<vmem>>, %arg4: memref<33x32xf32, #tpu.memory_space<vmem>>, %arg5: memref<1x32xf32, #tpu.memory_space<vmem>>, %arg6: memref<1x32xf32, #tpu.memory_space<vmem>>, %arg7: memref<1x32xf32, #tpu.memory_space<vmem>>) attributes {dimension_semantics = [], scalar_prefetch = 0 : i64, scratch_operands = 0 : i64, tpu.core_type = #tpu.core_type<tc>} {
    %c0 = arith.constant 0 : index
    %c0_0 = arith.constant 0 : index
    %0 = vector.load %arg3[%c0, %c0_0] : memref<65x128xf32, #tpu.memory_space<vmem>>, vector<64x128xf32>
    %c64 = arith.constant 64 : index
    %c0_1 = arith.constant 0 : index
    %1 = vector.load %arg3[%c64, %c0_1] : memref<65x128xf32, #tpu.memory_space<vmem>>, vector<1x128xf32>
    %c0_2 = arith.constant 0 : index
    %c0_3 = arith.constant 0 : index
    %2 = vector.load %arg1[%c0_2, %c0_3] : memref<1x32xf32, #tpu.memory_space<vmem>>, vector<1x32xf32>
    %c0_4 = arith.constant 0 : index
    %c0_5 = arith.constant 0 : index
    %3 = vector.load %arg2[%c0_4, %c0_5] : memref<1x32xf32, #tpu.memory_space<vmem>>, vector<1x32xf32>
    %c0_6 = arith.constant 0 : index
    %c0_7 = arith.constant 0 : index
    %4 = vector.load %arg0[%c0_6, %c0_7] : memref<1x32xf32, #tpu.memory_space<vmem>>, vector<1x32xf32>
    %5 = tpu.concatenate %4, %2 in 1 : vector<1x32xf32>, vector<1x32xf32> -> vector<1x64xf32>
    %cst = arith.constant dense<0.000000e+00> : vector<1x128xf32>
    %6 = tpu.matmul %5, %0, %cst {dimension_numbers = #tpu.dot_dimension_numbers<[1], [0], [0], [1], [0, 0, 1, 1], [], []>} : vector<1x64xf32>, vector<64x128xf32>, vector<1x128xf32> -> vector<1x128xf32>
    %7 = arith.addf %6, %1 : vector<1x128xf32>
    %8 = arith.negf %7 : vector<1x128xf32>
    %9 = math.exp %8 : vector<1x128xf32>
    %cst_8 = arith.constant 1.000000e+00 : f32
    %10 = vector.broadcast %cst_8 : f32 to vector<1x128xf32>
    %11 = arith.addf %10, %9 : vector<1x128xf32>
    %12 = arith.divf %10, %11 : vector<1x128xf32>
    %13 = math.tanh %7 : vector<1x128xf32>
    %14 = vector.extract_strided_slice %12 {offsets = [0, 0], sizes = [1, 32], strides = [1, 1]} : vector<1x128xf32> to vector<1x32xf32>
    %15 = vector.extract_strided_slice %12 {offsets = [0, 32], sizes = [1, 32], strides = [1, 1]} : vector<1x128xf32> to vector<1x32xf32>
    %16 = vector.extract_strided_slice %13 {offsets = [0, 64], sizes = [1, 32], strides = [1, 1]} : vector<1x128xf32> to vector<1x32xf32>
    %17 = vector.extract_strided_slice %12 {offsets = [0, 96], sizes = [1, 32], strides = [1, 1]} : vector<1x128xf32> to vector<1x32xf32>
    %18 = arith.mulf %15, %3 : vector<1x32xf32>
    %19 = arith.mulf %14, %16 : vector<1x32xf32>
    %20 = arith.addf %18, %19 : vector<1x32xf32>
    %21 = math.tanh %20 : vector<1x32xf32>
    %22 = arith.mulf %17, %21 : vector<1x32xf32>
    %c0_9 = arith.constant 0 : index
    %c0_10 = arith.constant 0 : index
    %23 = vector.load %arg6[%c0_9, %c0_10] : memref<1x32xf32, #tpu.memory_space<vmem>>, vector<1x32xf32>
    tpu.vector_store %arg6[%c0_9, %c0_10], %22 {strides = array<i32>} : memref<1x32xf32, #tpu.memory_space<vmem>>, vector<1x32xf32>,
    %c0_11 = arith.constant 0 : index
    %c0_12 = arith.constant 0 : index
    %24 = vector.load %arg7[%c0_11, %c0_12] : memref<1x32xf32, #tpu.memory_space<vmem>>, vector<1x32xf32>
    tpu.vector_store %arg7[%c0_11, %c0_12], %20 {strides = array<i32>} : memref<1x32xf32, #tpu.memory_space<vmem>>, vector<1x32xf32>,
    %c0_13 = arith.constant 0 : index
    %c0_14 = arith.constant 0 : index
    %25 = vector.load %arg4[%c0_13, %c0_14] : memref<33x32xf32, #tpu.memory_space<vmem>>, vector<32x32xf32>
    %c32 = arith.constant 32 : index
    %c0_15 = arith.constant 0 : index
    %26 = vector.load %arg4[%c32, %c0_15] : memref<33x32xf32, #tpu.memory_space<vmem>>, vector<1x32xf32>
    %cst_16 = arith.constant dense<0.000000e+00> : vector<1x32xf32>
    %27 = tpu.matmul %22, %25, %cst_16 {dimension_numbers = #tpu.dot_dimension_numbers<[1], [0], [0], [1], [0, 0, 1, 1], [], []>} : vector<1x32xf32>, vector<32x32xf32>, vector<1x32xf32> -> vector<1x32xf32>
    %28 = arith.addf %27, %26 : vector<1x32xf32>
    %c0_17 = arith.constant 0 : index
    %c0_18 = arith.constant 0 : index
    %29 = vector.load %arg5[%c0_17, %c0_18] : memref<1x32xf32, #tpu.memory_space<vmem>>, vector<1x32xf32>
    tpu.vector_store %arg5[%c0_17, %c0_18], %28 {strides = array<i32>} : memref<1x32xf32, #tpu.memory_space<vmem>>, vector<1x32xf32>,
    return
  }
}

</mosaic_0001>

<bundles_post_ra>
// kernel: tpu_custom_call.1
= control target key start
LH: loop header
LB: loop body
LE: loop exit
PB: predicated region body
PF: predicated region fallthrough
CT: control target
= control target key end

     0   :  { %13 = vsyncpa [#allocation3], 0  ;;  %s684_s0 = inlined_call_operand.vmem [shape: f32[1,32], index: 0, kind: input, shape index: {}]   ;;  %s685_s1 = inlined_call_operand.hbm [shape: f32[1,32], index: 1, kind: input, shape index: {}, may-alias: {1,6}]   ;;  %s686_s2 = inlined_call_operand.hbm [shape: f32[1,32], index: 2, kind: input, shape index: {}, may-alias: {2,7}]   ;;  %s687_s3 = inlined_call_operand.vmem [shape: f32[65,128], index: 3, kind: input, shape index: {}]   ;;  %s688_s4 = inlined_call_operand.vmem [shape: f32[33,32], index: 4, kind: input, shape index: {}]   ;;  %s689_s5 = inlined_call_operand.hbm [shape: f32[1,32], index: 5, kind: output, shape index: {0}]   ;;  %s690_s6 = inlined_call_operand.hbm [shape: f32[1,32], index: 6, kind: output, shape index: {1}, may-alias: {1,6}]   ;;  %s691_s7 = inlined_call_operand.hbm [shape: f32[1,32], index: 7, kind: output, shape index: {2}, may-alias: {2,7}]  }
   0x1   :  { %14 = vsyncpa [#allocation6], 0 }
   0x2   :  { %15 = vsyncpa [#allocation4], 0 }
   0x3   :  { %16 = vsyncpa [#allocation9], 0  ;;  %s513_s24 = smov [#allocation2]   ;;  %s514_s26 = smov [#allocation5]  }
   0x4   :  { %s25_s25 = sshll.u32 %s513_s24, 4  ;;  %s35_s27 = sshll.u32 %s514_s26, 4  ;;  %s26_s25 = int_to_ptr.vmem [resolvable:$true] %s25_s25  ;;  %s36_s27 = int_to_ptr.vmem [resolvable:$true] %s35_s27 }
   0x5   :  { %s395_s30 = scalar_lea.hbm %s685_s1, 16 }
   0x6   :  { %p396_p0 = scmp.ne.s32.totalorder %s685_s1, %s395_s30  ;;  %p399_p1 = scmp.lt.u32.totalorder %s395_s30, %s685_s1 }
   0x8   :  { %p401_p2 = pnand %p399_p1, %p396_p0 }
   0xa   :  { %404 = shalt.err (!%p401_p2)
}
   0xb   :  { %s405_s12 = scalar_lea.vmem %s26_s25, 16  ;;  %s409_s13 = scalar_lea.vmem %s26_s25, 32 }
   0xc   :  { %p406_p3 = scmp.ne.s32.totalorder %s26_s25, %s405_s12  ;;  %p410_p4 = scmp.lt.s32.totalorder %s26_s25, %s26_s25 }
   0xd   :  { %p411_p5 = scmp.lt.s32.totalorder %s409_s13, %s405_s12 }
   0xf   :  { %p412_p6 = por %p411_p5, %p410_p4 }
  0x11   :  { %p413_p7 = pnand %p412_p6, %p406_p3 }
  0x13   :  { %416 = shalt.err (!%p413_p7)
}
  0x14   :  { %28 = dma.hbm_to_vmem [thread:$0]  %s685_s1, 16, %s26_s25, [#allocation3]  }
  0x15   :  { %s417_s18 = scalar_lea.hbm %s686_s2, 16 }
  0x16   :  { %p418_p8 = scmp.ne.s32.totalorder %s686_s2, %s417_s18  ;;  %p421_p9 = scmp.lt.u32.totalorder %s417_s18, %s686_s2 }
  0x18   :  { %p423_p10 = pnand %p421_p9, %p418_p8 }
  0x1a   :  { %426 = shalt.err (!%p423_p10)
}
  0x1b   :  { %s427_s23 = scalar_lea.vmem %s36_s27, 16  ;;  %s431_s24 = scalar_lea.vmem %s36_s27, 32 }
  0x1c   :  { %p428_p11 = scmp.ne.s32.totalorder %s36_s27, %s427_s23  ;;  %p432_p12 = scmp.lt.s32.totalorder %s36_s27, %s36_s27 }
  0x1d   :  { %p433_p13 = scmp.lt.s32.totalorder %s431_s24, %s427_s23 }
  0x1f   :  { %p434_p0 = por %p433_p13, %p432_p12 }
  0x21   :  { %p435_p1 = pnand %p434_p0, %p428_p11 }
  0x23   :  { %438 = shalt.err (!%p435_p1)
}
  0x24   :  { %38 = dma.hbm_to_vmem [thread:$0]  %s686_s2, 16, %s36_s27, [#allocation6]  }
  0x25   :  { %505 = dma.done.wait [#allocation3], 16  }
  0x26   :  { %506 = vsyncadd [#allocation3], 4294967280 }
  0x27   :  { %507 = dma.done.wait [#allocation6], 16  }
  0x28   :  { %508 = vsyncadd [#allocation6], 4294967280  ;;  %v515_v0 = vmov 0.0|0.0   ;;  %vm516_vm0 = vmmov 0   ;;  %v517_v1 = vmov 0.0   ;;  %v49_v3 = vld [vmem:[%s687_s3] sm:$0xff] }
  0x29   :  { %358 = vmatprep.subr.bf16.mxu0 %v515_v0  ;;  %370 = vmatprep.subr.bf16.mxu1 %v515_v0  ;;  %v309_v2 = vld [vmem:[#allocation2] ss:$0 sm:$0xff]  ;;  %v50_v4 = vld [vmem:[%s687_s3 + $0x8] sm:$0xff]  ;;  %s518_s27 = smov 32   ;;  %v51_v6 = vld [vmem:[%s687_s3 + $0x10] sm:$0xff]  ;;  %vm69_vm1 = vcmask 261120  }
  0x2a   :  { %344 = vmatprep.mubr.msk.f32.mxu0 %vm516_vm0, %v517_v1  ;;  %355 = vmatprep.mubr.msk.f32.mxu1 %vm516_vm0, %v517_v1  ;;  %v359_v5 = vpack.c.bf16 %v50_v4, %v49_v3  ;;  %v52_v7 = vld [vmem:[%s687_s3 + $0x18] sm:$0xff]  ;;  %v312_v9 = vld [vmem:[#allocation5] ss:$0 sm:$0xff]  ;;  %v54_v11 = vld [vmem:[%s687_s3 + $0x28] sm:$0xff]  ;;  %vm71_vm2 = vcmask 523264   ;;  %s519_s23 = smov 64  }
  0x2b   :  { %66 = vrot.lane.b32.xlu0 %v309_v2, %s518_s27  ;;  %v362_v8 = vpack.c.bf16 %v52_v7, %v51_v6  ;;  %v53_v10 = vld [vmem:[%s687_s3 + $0x20] sm:$0xff]  ;;  %157 = vrot.lane.b32.xlu1 %v312_v9, %s518_s27  ;;  %v55_v13 = vld [vmem:[%s687_s3 + $0x30] sm:$0xff]  ;;  %s520_s2 = smov 96   ;;  %vm181_vm3 = vcmask 253952   ;;  %s521_s30 = smov [#allocation8]  }
  0x2c   :  { %360 = vmatpush3.bf16.msra.mxu0 %v359_v5  ;;  %v365_v12 = vpack.c.bf16 %v54_v11, %v53_v10  ;;  %v56_v14 = vld [vmem:[%s687_s3 + $0x38] sm:$0xff]  ;;  %v60_v16 = vld [vmem:[%s684_s0] sm:$0x1]  ;;  %v189_v35 = vld [vmem:[%s688_s4 + $0x8] sm:$0xff]  ;;  %s282_s8 = sshll.u32 %s521_s30, 4  ;;  %s283_s8 = int_to_ptr.vmem [resolvable:$true] %s282_s8 }
  0x2d   :  { %361 = vmatprep.subr.bf16.mxu0 %v515_v0  ;;  %v368_v15 = vpack.c.bf16 %v56_v14, %v55_v13  ;;  %v57_v19 = vld [vmem:[%s687_s3 + $0x40] sm:$0x1]  ;;  %v190_v36 = vld [vmem:[%s688_s4 + $0x10] sm:$0xff]  ;;  %v191_v38 = vld [vmem:[%s688_s4 + $0x18] sm:$0xff]  ;;  %s439_s9 = scalar_lea.vmem %s283_s8, 16  ;;  %s443_s10 = scalar_lea.vmem %s283_s8, 32 }
  0x2e   :  { %v188_v34 = vld [vmem:[%s688_s4] sm:$0xff]  ;;  %v374_v39 = vpack.c.bf16 %v191_v38, %v190_v36  ;;  %p440_p2 = scmp.ne.s32.totalorder %s283_s8, %s439_s9  ;;  %p444_p3 = scmp.lt.s32.totalorder %s283_s8, %s283_s8 }
  0x2f   :  { %v371_v37 = vpack.c.bf16 %v189_v35, %v188_v34  ;;  %p445_p4 = scmp.lt.s32.totalorder %s443_s10, %s439_s9 }
  0x30   :  { %363 = vmatpush3.bf16.msra.mxu0 %v362_v8 }
  0x31   :  { %364 = vmatprep.subr.bf16.mxu0 %v515_v0  ;;  %372 = vmatpush3.bf16.msra.mxu1 %v371_v37  ;;  %p446_p5 = por %p445_p4, %p444_p3 }
  0x32   :  { %373 = vmatprep.subr.bf16.mxu1 %v515_v0 }
  0x33   :  { %p447_p6 = pnand %p446_p5, %p440_p2 }
  0x34   :  { %366 = vmatpush3.bf16.msra.mxu0 %v365_v12 }
  0x35   :  { %367 = vmatprep.subr.bf16.mxu0 %v515_v0  ;;  %375 = vmatpush3.bf16.msra.mxu1 %v374_v39 }
  0x38   :  { %369 = vmatpush3.bf16.msra.mxu0 %v368_v15 }
  0x9d   :  { %v67_v17 = vpop.permute.xlu0 %66  ;;  %v158_v30 = vpop.permute.xlu1 %157 }
  0x9e   :  { %v70_v18 = vsel %vm69_vm1, %v60_v16, %v67_v17 }
  0x9f   :  { %345 = vmatmul.mubr.msk.f32.vlgmr.msra.gmra.mrb[0].mxu0 %vm71_vm2, %v70_v18 }
 0x172   :  { %v141_v20 = vpop.f32.mrb[0].mxu0 }
 0x173   :  { %v142_v21 = vadd.f32 %v141_v20, %v57_v19  ;;  %v346_v22 = vpop.f32.mrb[1].mxu0 }
 0x175   :  { %387 = vtanh.f32 %v142_v21  ;;  %v311_v24 = vmul.f32 -1.442695, %v142_v21 }
 0x177   :  { %389 = vpow2.f32 %v311_v24 }
 0x17f   :  { %v388_v23 = vpop.eup %387 }
 0x180   :  { %162 = vrot.lane.b32.xlu0 %v388_v23, %s519_s23 }
 0x181   :  { %v390_v25 = vpop.eup %389 }
 0x182   :  { %v148_v26 = vadd.f32 1.0, %v390_v25 }
 0x184   :  { %391 = vrcp.f32 %v148_v26 }
 0x18e   :  { %v392_v27 = vpop.eup %391 }
 0x18f   :  { %v160_v31 = vmul.f32 %v392_v27, %v158_v30 }
 0x1f2   :  { %v163_v28 = vpop.permute.xlu0 %162 }
 0x1f3   :  { %v165_v29 = vmul.f32 %v392_v27, %v163_v28 }
 0x1f5   :  { %167 = vrot.lane.b32.xlu1 %v165_v29, %s518_s27 }
 0x267   :  { %v168_v32 = vpop.permute.xlu1 %167 }
 0x268   :  { %v170_v33 = vadd.f32 %v168_v32, %v160_v31 }
 0x26a   :  { %393 = vtanh.f32 %v170_v33 }
 0x274   :  { %v394_v40 = vpop.eup %393 }
 0x275   :  { %173 = vrot.lane.b32.xlu0 %v394_v40, %s519_s23 }
 0x279   :  { %184 = vrot.lane.b32.xlu0 %v170_v33, %s520_s2 }
 0x2e7   :  { %v174_v41 = vpop.permute.xlu0 %173 }
 0x2e8   :  { %v176_v42 = vmul.f32 %v392_v27, %v174_v41 }
 0x2ea   :  { %178 = vrot.lane.b32.xlu1 %v176_v42, %s518_s27 }
 0x2eb   :  { %v185_v43 = vpop.permute.xlu0 %184 }
 0x2ec   :  { %187 = vst.msk [vmem:[#allocation10] sm:$0x1] %vm181_vm3, %v185_v43 }
 0x35c   :  { %v179_v44 = vpop.permute.xlu1 %178 }
 0x35d   :  { %182 = vst.msk [vmem:[#allocation8] sm:$0x1] %vm181_vm3, %v179_v44  ;;  %356 = vmatmul.mubr.msk.f32.vlgmr.msra.gmra.mrb[0].mxu1 %vm69_vm1, %v179_v44 }
 0x35e   :  { %450 = shalt.err (!%p447_p6)
}
 0x35f   :  { %s451_s12 = scalar_lea.hbm %s690_s6, 16 }
 0x360   :  { %p452_p7 = scmp.ne.s32.totalorder %s690_s6, %s451_s12  ;;  %p455_p8 = scmp.lt.u32.totalorder %s451_s12, %s690_s6 }
 0x362   :  { %p457_p9 = pnand %p455_p8, %p452_p7 }
 0x364   :  { %460 = shalt.err (!%p457_p9)
}
 0x365   :  { %285 = dma.vmem_to_hbm [thread:$0]  %s283_s8, 16, %s690_s6, [#allocation9]  }
 0x366   :  { %s522_s19 = smov [#allocation10]  }
 0x367   :  { %s292_s20 = sshll.u32 %s522_s19, 4  ;;  %s293_s20 = int_to_ptr.vmem [resolvable:$true] %s292_s20 }
 0x368   :  { %s461_s21 = scalar_lea.vmem %s293_s20, 16  ;;  %s465_s22 = scalar_lea.vmem %s293_s20, 32 }
 0x369   :  { %p462_p10 = scmp.ne.s32.totalorder %s293_s20, %s461_s21  ;;  %p466_p11 = scmp.lt.s32.totalorder %s293_s20, %s293_s20 }
 0x36a   :  { %p467_p12 = scmp.lt.s32.totalorder %s465_s22, %s461_s21 }
 0x36c   :  { %p468_p13 = por %p467_p12, %p466_p11 }
 0x36e   :  { %p469_p0 = pnand %p468_p13, %p462_p10 }
 0x370   :  { %472 = shalt.err (!%p469_p0)
}
 0x371   :  { %s473_s3 = scalar_lea.hbm %s691_s7, 16 }
 0x372   :  { %p474_p1 = scmp.ne.s32.totalorder %s691_s7, %s473_s3  ;;  %p477_p2 = scmp.lt.u32.totalorder %s473_s3, %s691_s7 }
 0x374   :  { %p479_p3 = pnand %p477_p2, %p474_p1 }
 0x376   :  { %482 = shalt.err (!%p479_p3)
}
 0x377   :  { %295 = dma.vmem_to_hbm [thread:$0]  %s293_s20, 16, %s691_s7, [#allocation9]   ;;  %v192_v45 = vld [vmem:[%s688_s4 + $0x20] sm:$0x1] }
 0x378   :  { %s523_s30 = smov [#allocation7]  }
 0x379   :  { %s272_s8 = sshll.u32 %s523_s30, 4  ;;  %s273_s8 = int_to_ptr.vmem [resolvable:$true] %s272_s8 }
 0x37a   :  { %s483_s9 = scalar_lea.vmem %s273_s8, 16  ;;  %s487_s10 = scalar_lea.vmem %s273_s8, 32 }
 0x37b   :  { %p484_p4 = scmp.ne.s32.totalorder %s273_s8, %s483_s9  ;;  %p488_p5 = scmp.lt.s32.totalorder %s273_s8, %s273_s8 }
 0x37c   :  { %p489_p6 = scmp.lt.s32.totalorder %s487_s10, %s483_s9 }
 0x37e   :  { %p490_p7 = por %p489_p6, %p488_p5 }
 0x380   :  { %p491_p8 = pnand %p490_p7, %p484_p4 }
 0x430   :  { %v261_v46 = vpop.f32.mrb[0].mxu1 }
 0x431   :  { %v262_v47 = vadd.f32 %v261_v46, %v192_v45  ;;  %v357_v48 = vpop.f32.mrb[1].mxu1 }
 0x433   :  { %265 = vst.msk [vmem:[#allocation7] sm:$0x1] %vm181_vm3, %v262_v47 }
 0x434   :  { %494 = shalt.err (!%p491_p8)
}
 0x435   :  { %s495_s4 = scalar_lea.hbm %s689_s5, 16 }
 0x436   :  { %p496_p9 = scmp.ne.s32.totalorder %s689_s5, %s495_s4  ;;  %p499_p10 = scmp.lt.u32.totalorder %s495_s4, %s689_s5 }
 0x438   :  { %p501_p11 = pnand %p499_p10, %p496_p9 }
 0x43a   :  { %504 = shalt.err (!%p501_p11)
}
 0x43b   :  { %275 = dma.vmem_to_hbm [thread:$0]  %s273_s8, 16, %s689_s5, [#allocation4]  }
 0x43c   :  { %509 = dma.done.wait [#allocation4], 16  }
 0x43d   :  { %510 = vsyncadd [#allocation4], 4294967280 }
 0x43e   :  { %511 = dma.done.wait [#allocation9], 32  }
 0x43f   :  { %512 = vsyncadd [#allocation9], 4294967264 }
 0x440   :  { %305 = vsyncpa [#allocation3], 1 }
 0x441   :  { %306 = vsyncpa [#allocation6], 1 }
 0x442   :  { %307 = vsyncpa [#allocation4], 1 }
 0x443   :  { %308 = vsyncpa [#allocation9], 1 }

</bundles_post_ra>
